<compile_context>
chip_gen: v5e
topology: v5e:2x2
jax: 0.10.0
libtpu: 0.0.40
codegen_flags: <defaults>
</compile_context>

<pallas_src>
import math
from functools import partial

import jax
import jax.numpy as jnp
from jax.experimental import pallas as pl
from jax.experimental.pallas import tpu as pltpu

_PALLAS_MIN_ELEMS = 1024   # below this, a kernel launch is pure overhead
_LANES = 512               # lane-dense last dim (multiple of 128)
_MAX_BLOCK_ROWS = 512      # (512, 512) f32 block = 1 MiB per buffer


# ----------------------------- kernels -------------------------------------

def _wing_from_delta(delta_f32, *, omega, inv_epsilon, C, loss_weight):
    losses = jnp.where(delta_f32 < omega,
                       omega * jnp.log1p(delta_f32 * inv_epsilon),
                       delta_f32 - C)
    if loss_weight != 1.0:           # static Python check; free when == 1.0
        losses = losses * loss_weight
    return losses


def _wing_kernel_unweighted(pred_ref, target_ref, out_ref, *,
                            omega, inv_epsilon, C, loss_weight):
    p = pred_ref[...].astype(jnp.float32)
    t = target_ref[...].astype(jnp.float32)
    delta = jnp.abs(t - p)
    out_ref[...] = _wing_from_delta(
        delta, omega=omega, inv_epsilon=inv_epsilon, C=C,
        loss_weight=loss_weight).astype(out_ref.dtype)


def _wing_kernel_weighted(pred_ref, target_ref, weight_ref, out_ref, *,
                          omega, inv_epsilon, C, loss_weight):
    p = pred_ref[...].astype(jnp.float32)
    t = target_ref[...].astype(jnp.float32)
    w = weight_ref[...].astype(jnp.float32)
    # |w*t - w*p| == |w * (t - p)| exactly (any sign of w): one multiply.
    delta = jnp.abs(w * (t - p))
    out_ref[...] = _wing_from_delta(
        delta, omega=omega, inv_epsilon=inv_epsilon, C=C,
        loss_weight=loss_weight).astype(out_ref.dtype)


# --------------------------- pallas wrapper ---------------------------------

def _to_lane_dense(x, total_padded):
    """Flatten to 1-D, zero-pad, reshape to a (rows, _LANES) lane-dense slab."""
    flat = x.reshape(-1)
    pad = total_padded - flat.shape[0]
    if pad:
        flat = jnp.pad(flat, (0, pad))
    return flat.reshape(-1, _LANES)


def _wing_loss_pallas(output, target, weight, *, omega, epsilon, C, loss_weight):
    orig_shape = output.shape
    total = int(output.size)

    n_rows = -(-total // _LANES)                            # ceil div
    block_rows = min(_MAX_BLOCK_ROWS, ((n_rows + 7) // 8) * 8)
    n_blocks = -(-n_rows // block_rows)
    n_rows_padded = n_blocks * block_rows
    total_padded = n_rows_padded * _LANES

    inputs = [output, target] if weight is None else [output, target, weight]
    inputs_2d = [_to_lane_dense(a, total_padded) for a in inputs]

    kernel = _wing_kernel_unweighted if weight is None else _wing_kernel_weighted
    kernel = partial(kernel, omega=omega, inv_epsilon=1.0 / epsilon, C=C,
                     loss_weight=loss_weight)

    spec = pl.BlockSpec((block_rows, _LANES), lambda i: (i, 0))

    out_2d = pl.pallas_call(
        kernel,
        out_shape=jax.ShapeDtypeStruct((n_rows_padded, _LANES), output.dtype),
        grid=(n_blocks,),
        in_specs=[spec] * len(inputs_2d),
        out_specs=spec,
        compiler_params=pltpu.CompilerParams(
            dimension_semantics=("parallel",)),
    )(*inputs_2d)

    return out_2d.reshape(-1)[:total].reshape(orig_shape)


# ----------------------------- public API -----------------------------------

def wing_loss(output, target, target_weight=None, *,
              omega=10.0, epsilon=2.0, use_target_weight=False,
              loss_weight=1.0):
    """Elementwise wing loss; same shape as `output` (mirrors the nn.Module)."""
    assert output.shape == target.shape
    C = omega * (1.0 - math.log(1.0 + omega / epsilon))

    weight = None
    if use_target_weight:
        assert target_weight is not None
        tw = target_weight
        if tw.ndim < output.ndim:
            tw = tw.reshape(tw.shape + (1,) * (output.ndim - tw.ndim))
        # Module documents target_weight as [N, K, D]; in that (common) case
        # this broadcast is a no-op and no extra HBM array is materialized.
        weight = jnp.broadcast_to(tw, output.shape).astype(output.dtype)

    if output.size < _PALLAS_MIN_ELEMS:
        # Too small to amortize pallas_call launch + DMA setup; let XLA fuse.
        return _wing_elementwise(output, target, weight,
                                 omega=omega, epsilon=epsilon, C=C,
                                 loss_weight=loss_weight)

    return _wing_loss_pallas(output, target, weight,
                             omega=omega, epsilon=epsilon, C=C,
                             loss_weight=loss_weight)


def _wing_elementwise(output, target, weight, *, omega, epsilon, C, loss_weight):
    """Tiny-input fallback (plain fused XLA), same math as the kernels."""
    if weight is not None:
        output = output * weight
        target = target * weight
    delta = jnp.abs(target - output)
    losses = jnp.where(delta < omega,
                       omega * jnp.log1p(delta / epsilon),
                       delta - C)
    return losses * loss_weight


def _wing_loss_ref(output, target, target_weight=None, *,
                   omega=10.0, epsilon=2.0, use_target_weight=False,
                   loss_weight=1.0):
    """Plain-JAX reference mirroring the PyTorch module line-by-line."""
    C = omega * (1.0 - math.log(1.0 + omega / epsilon))
    if use_target_weight:
        output = output * target_weight
        target = target * target_weight
    delta = jnp.abs(target - output)
    losses = jnp.where(delta < omega,
                       omega * jnp.log(1.0 + delta / epsilon),
                       delta - C)
    return losses * loss_weight


# ------------------------------- demo ---------------------------------------

if __name__ == "__main__":
    key = jax.random.PRNGKey(0)
    k1, k2, k3 = jax.random.split(key, 3)

    # Small but realistic keypoint-regression shape (COCO-style 17 keypoints).
    N, K, D = 32, 17, 2     # 1088 elements -> takes the Pallas path
    output = jax.random.normal(k1, (N, K, D), dtype=jnp.float32) * 8.0
    target = jax.random.normal(k2, (N, K, D), dtype=jnp.float32) * 8.0
    target_weight = jax.random.uniform(k3, (N, K, D), dtype=jnp.float32)

    # Path 1: unweighted (default module config) -> 2-input Pallas kernel.
    loss = jax.block_until_ready(wing_loss(output, target))
    ref = _wing_loss_ref(output, target)
    assert loss.shape == output.shape
    assert jnp.allclose(loss, ref, atol=1e-5, rtol=1e-5), "mismatch (unweighted)"

    # Path 2: weighted, loss_weight != 1 -> 3-input Pallas kernel.
    loss_w = jax.block_until_ready(
        wing_loss(output, target, target_weight,
                  use_target_weight=True, loss_weight=0.5))
    ref_w = _wing_loss_ref(output, target, target_weight,
                           use_target_weight=True, loss_weight=0.5)
    assert jnp.allclose(loss_w, ref_w, atol=1e-5, rtol=1e-5), "mismatch (weighted)"

    # Path 3: tiny input -> plain-XLA fallback (kernel launch not worth it).
    tiny_o, tiny_t = output[:2, :4], target[:2, :4]
    loss_tiny = jax.block_until_ready(wing_loss(tiny_o, tiny_t))
    ref_tiny = _wing_loss_ref(tiny_o, tiny_t)
    assert jnp.allclose(loss_tiny, ref_tiny, atol=1e-5, rtol=1e-5), "mismatch (tiny)"

    print("KERNEL_OK")
</pallas_src>

<mosaic_0001>
module attributes {stable_mosaic.version = 11 : i64} {
  func.func @_wing_kernel_unweighted(%arg0: i32, %arg1: memref<8x512xf32, #tpu.memory_space<vmem>>, %arg2: memref<8x512xf32, #tpu.memory_space<vmem>>, %arg3: memref<8x512xf32, #tpu.memory_space<vmem>>) attributes {dimension_semantics = [#tpu.dimension_semantics<parallel>], iteration_bounds = array<i64: 1>, scalar_prefetch = 0 : i64, scratch_operands = 0 : i64, tpu.core_type = #tpu.core_type<tc>, window_params = [{transform_indices = @transform_0, window_bounds = array<i64: 8, 512>}, {transform_indices = @transform_1, window_bounds = array<i64: 8, 512>}, {transform_indices = @transform_2, window_bounds = array<i64: 8, 512>}]} {
    %c0 = arith.constant 0 : index
    %c0_0 = arith.constant 0 : index
    %0 = vector.load %arg1[%c0, %c0_0] : memref<8x512xf32, #tpu.memory_space<vmem>>, vector<8x512xf32>
    %c0_1 = arith.constant 0 : index
    %c0_2 = arith.constant 0 : index
    %1 = vector.load %arg2[%c0_1, %c0_2] : memref<8x512xf32, #tpu.memory_space<vmem>>, vector<8x512xf32>
    %2 = arith.subf %1, %0 : vector<8x512xf32>
    %3 = math.absf %2 : vector<8x512xf32>
    %cst = arith.constant 1.000000e+01 : f32
    %4 = vector.broadcast %cst : f32 to vector<8x512xf32>
    %5 = arith.cmpf olt, %3, %4 : vector<8x512xf32>
    %cst_3 = arith.constant 5.000000e-01 : f32
    %6 = vector.broadcast %cst_3 : f32 to vector<8x512xf32>
    %7 = arith.mulf %3, %6 : vector<8x512xf32>
    %8 = math.log1p %7 : vector<8x512xf32>
    %cst_4 = arith.constant 1.000000e+01 : f32
    %9 = vector.broadcast %cst_4 : f32 to vector<8x512xf32>
    %10 = arith.mulf %9, %8 : vector<8x512xf32>
    %cst_5 = arith.constant -7.9175949 : f32
    %11 = vector.broadcast %cst_5 : f32 to vector<8x512xf32>
    %12 = arith.subf %3, %11 : vector<8x512xf32>
    %13 = arith.select %5, %10, %12 : vector<8x512xi1>, vector<8x512xf32>
    %c0_6 = arith.constant 0 : index
    %c0_7 = arith.constant 0 : index
    %14 = vector.load %arg3[%c0_6, %c0_7] : memref<8x512xf32, #tpu.memory_space<vmem>>, vector<8x512xf32>
    tpu.vector_store %arg3[%c0_6, %c0_7], %13 {strides = array<i32>} : memref<8x512xf32, #tpu.memory_space<vmem>>, vector<8x512xf32>,
    return
  }
  func.func @transform_0(%arg0: i32) -> (i32, i32) {
    %c0_i32 = arith.constant 0 : i32
    %c0_i32_0 = arith.constant 0 : i32
    return %arg0, %c0_i32 : i32, i32
  }
  func.func @transform_1(%arg0: i32) -> (i32, i32) {
    %c0_i32 = arith.constant 0 : i32
    %c0_i32_0 = arith.constant 0 : i32
    return %arg0, %c0_i32 : i32, i32
  }
  func.func @transform_2(%arg0: i32) -> (i32, i32) {
    %c0_i32 = arith.constant 0 : i32
    %c0_i32_0 = arith.constant 0 : i32
    return %arg0, %c0_i32 : i32, i32
  }
}

</mosaic_0001>

<bundles_post_ra>
// kernel: tpu_custom_call.1
= control target key start
LH: loop header
LB: loop body
LE: loop exit
PB: predicated region body
PF: predicated region fallthrough
CT: control target
= control target key end

     0   :  { %7 = vsyncpa [#allocation3], 0  ;;  %s271_s0 = inlined_call_operand.hbm [shape: f32[8,512], index: 0, kind: input, shape index: {}]   ;;  %s272_s1 = inlined_call_operand.hbm [shape: f32[8,512], index: 1, kind: input, shape index: {}]   ;;  %s273_s2 = inlined_call_operand.hbm [shape: f32[8,512], index: 2, kind: output, shape index: {}]  }
   0x1   :  { %8 = vsyncpa [#allocation6], 0 }
   0x2   :  { %9 = vsyncpa [#allocation4], 0  ;;  %s15_s11 = sshll.u32 %s271_s0, 4  ;;  %s227_s12 = smov [#allocation2]   ;;  %s16_s11 = int_to_ptr.hbm [resolvable:$true] %s15_s11 }
   0x3   :  { %s17_s13 = sshll.u32 %s227_s12, 4  ;;  %s26_s16 = sshll.u32 %s272_s1, 4  ;;  %s18_s13 = int_to_ptr.vmem [resolvable:$true] %s17_s13  ;;  %s27_s16 = int_to_ptr.hbm [resolvable:$true] %s26_s16 }
   0x4   :  { %20 = dma.hbm_to_vmem [thread:$0]  %s16_s11, 512, %s18_s13, [#allocation3]  }
   0x5   :  { %s228_s17 = smov [#allocation5]  }
   0x6   :  { %s28_s18 = sshll.u32 %s228_s17, 4  ;;  %s29_s18 = int_to_ptr.vmem [resolvable:$true] %s28_s18 }
   0x7   :  { %31 = dma.hbm_to_vmem [thread:$0]  %s27_s16, 512, %s29_s18, [#allocation6]  }
   0x8   :  { %221 = dma.done.wait [#allocation3], 512  }
   0x9   :  { %222 = vsyncadd [#allocation3], 4294966784 }
   0xa   :  { %223 = dma.done.wait [#allocation6], 512  }
   0xb   :  { %224 = vsyncadd [#allocation6], 4294966784  ;;  %v40_v0 = vld [vmem:[#allocation2] sm:$0xff]  ;;  %v41_v2 = vld [vmem:[#allocation2 + $0x8] sm:$0xff]  ;;  %s229_s0 = smov [#allocation7]   ;;  %s123_s21 = sshll.u32 %s273_s2, 4  ;;  %s124_s21 = int_to_ptr.hbm [resolvable:$true] %s123_s21 }
   0xc   :  { %v44_v1 = vld [vmem:[#allocation5] sm:$0xff]  ;;  %v45_v4 = vld [vmem:[#allocation5 + $0x8] sm:$0xff]  ;;  %v42_v5 = vld [vmem:[#allocation2 + $0x10] sm:$0xff]  ;;  %s121_s1 = sshll.u32 %s229_s0, 4  ;;  %s122_s1 = int_to_ptr.vmem [resolvable:$true] %s121_s1 }
   0xd   :  { %v48_v3 = vsub.f32 %v44_v1, %v40_v0  ;;  %v46_v6 = vld [vmem:[#allocation5 + $0x10] sm:$0xff]  ;;  %v49_v7 = vsub.f32 %v45_v4, %v41_v2  ;;  %v43_v9 = vld [vmem:[#allocation2 + $0x18] sm:$0xff] }
   0xe   :  { %v50_v8 = vsub.f32 %v46_v6, %v42_v5  ;;  %v47_v10 = vld [vmem:[#allocation5 + $0x18] sm:$0xff] }
   0xf   :  { %v52_v11 = vand.u32 2147483647, %v48_v3  ;;  %v53_v12 = vand.u32 2147483647, %v49_v7  ;;  %v51_v14 = vsub.f32 %v47_v10, %v43_v9 }
  0x10   :  { %v54_v13 = vand.u32 2147483647, %v50_v8 }
  0x11   :  { %v60_v15 = vmul.f32 0.5, %v52_v11  ;;  %v61_v16 = vmul.f32 0.5, %v53_v12  ;;  %v251_v22 = vand.u32 2147483647, %v51_v14  ;;  %v134_v37 = vadd.f32 7.917595, %v52_v11 }
  0x12   :  { %v62_v19 = vmul.f32 0.5, %v54_v13  ;;  %vm56_vm2 = vcmp.lt.f32.partialorder %v52_v11, 10.0  ;;  %v135_v47 = vadd.f32 7.917595, %v53_v12  ;;  %vm57_vm4 = vcmp.lt.f32.partialorder %v53_v12, 10.0 }
  0x13   :  { %v64_v17 = vadd.f32 1.0, %v60_v15  ;;  %v67_v18 = vmul.f32 -0.5, %v60_v15  ;;  %v73_v20 = vadd.f32 1.0, %v61_v16  ;;  %v76_v21 = vmul.f32 -0.5, %v61_v16 }
  0x14   :  { %v82_v23 = vadd.f32 1.0, %v62_v19  ;;  %v85_v25 = vmul.f32 -0.5, %v62_v19  ;;  %v70_v26 = vand.u32 2147483647, %v60_v15  ;;  %v79_v28 = vand.u32 2147483647, %v61_v16 }
  0x15   :  { %141 = vlog2.f32 %v64_v17  ;;  %v68_v24 = vadd.f32 1.0, %v67_v18  ;;  %v77_v27 = vadd.f32 1.0, %v76_v21  ;;  %v63_v30 = vmul.f32 0.5, %v251_v22 }
  0x16   :  { %143 = vlog2.f32 %v73_v20  ;;  %v86_v29 = vadd.f32 1.0, %v85_v25  ;;  %v88_v31 = vand.u32 2147483647, %v62_v19  ;;  %vm254_vm0 = vcmp.lt.f32.partialorder %v70_v26, 0.0004427343 }
  0x17   :  { %145 = vlog2.f32 %v82_v23  ;;  %v69_v32 = vmul.f32 %v68_v24, %v60_v15  ;;  %v91_v33 = vadd.f32 1.0, %v63_v30  ;;  %v94_v34 = vmul.f32 -0.5, %v63_v30 }
  0x18   :  { %v78_v38 = vmul.f32 %v77_v27, %v61_v16  ;;  %vm258_vm1 = vcmp.lt.f32.partialorder %v79_v28, 0.0004427343  ;;  %v87_v42 = vmul.f32 %v86_v29, %v62_v19  ;;  %vm89_vm3 = vcmp.lt.f32.partialorder %v88_v31, 0.0004427343 }
  0x19   :  { %147 = vlog2.f32 %v91_v33  ;;  %v95_v45 = vadd.f32 1.0, %v94_v34  ;;  %v97_v49 = vand.u32 2147483647, %v63_v30  ;;  %v136_v52 = vadd.f32 7.917595, %v54_v13 }
  0x1a   :  { %vm58_vm5 = vcmp.lt.f32.partialorder %v54_v13, 10.0  ;;  %v137_v62 = vadd.f32 7.917595, %v251_v22  ;;  %vm59_vm7 = vcmp.lt.f32.partialorder %v251_v22, 10.0 }
  0x1b   :  { %v142_v35 = vpop.eup %141  ;;  %v96_v57 = vmul.f32 %v95_v45, %v63_v30  ;;  %vm98_vm6 = vcmp.lt.f32.partialorder %v97_v49, 0.0004427343 }
  0x1c   :  { %v144_v39 = vpop.eup %143  ;;  %v66_v40 = vmul.f32 0.6931472, %v142_v35 }
  0x1d   :  { %v146_v43 = vpop.eup %145  ;;  %v75_v44 = vmul.f32 0.6931472, %v144_v39 }
  0x1e   :  { %v72_v46 = vsel %vm254_vm0, %v69_v32, %v66_v40  ;;  %v84_v48 = vmul.f32 0.6931472, %v146_v43 }
  0x1f   :  { %v100_v50 = vmul.f32 10.0, %v72_v46  ;;  %v81_v51 = vsel %vm258_vm1, %v78_v38, %v75_v44  ;;  %v148_v58 = vpop.eup %147 }
  0x20   :  { %v101_v53 = vmul.f32 10.0, %v81_v51  ;;  %v90_v54 = vsel %vm89_vm3, %v87_v42, %v84_v48  ;;  %v93_v61 = vmul.f32 0.6931472, %v148_v58 }
  0x21   :  { %v108_v55 = vsel %vm56_vm2, %v100_v50, %v134_v37  ;;  %v102_v56 = vmul.f32 10.0, %v90_v54 }
  0x22   :  { %112 = vst [vmem:[#allocation7] sm:$0xff] %v108_v55  ;;  %v109_v59 = vsel %vm57_vm4, %v101_v53, %v135_v47  ;;  %v99_v63 = vsel %vm98_vm6, %v96_v57, %v93_v61 }
  0x23   :  { %113 = vst [vmem:[#allocation7 + $0x8] sm:$0xff] %v109_v59  ;;  %v110_v60 = vsel %vm58_vm5, %v102_v56, %v136_v52  ;;  %v103_v0 = vmul.f32 10.0, %v99_v63 }
  0x24   :  { %114 = vst [vmem:[#allocation7 + $0x10] sm:$0xff] %v110_v60 }
  0x25   :  { %v111_v1 = vsel %vm59_vm7, %v103_v0, %v137_v62 }
  0x26   :  { %115 = vst [vmem:[#allocation7 + $0x18] sm:$0xff] %v111_v1 }
  0x27   :  { %126 = dma.vmem_to_hbm [thread:$0]  %s122_s1, 512, %s124_s21, [#allocation4]  }
  0x28   :  { %225 = dma.done.wait [#allocation4], 512  }
  0x29   :  { %226 = vsyncadd [#allocation4], 4294966784 }
  0x2a   :  { %131 = vsyncpa [#allocation3], 1 }
  0x2b   :  { %132 = vsyncpa [#allocation6], 1 }
  0x2c   :  { %133 = vsyncpa [#allocation4], 1 }

</bundles_post_ra>
